<compile_context>
chip_gen: v5e
topology: v5e:2x2
jax: 0.10.0
libtpu: 0.0.40
codegen_flags: <defaults>
</compile_context>

<pallas_src>
import jax
import jax.numpy as jnp
from jax.experimental import pallas as pl
from jax.experimental.pallas import tpu as pltpu

K = 3  # conv kernel size of the placeholder backbone


# ----------------------------------------------------------------------------
# One-time parameter preparation (outside the forward path)
# ----------------------------------------------------------------------------
def fold_features_weight(conv_w_oikk, H, W):
    """Fold conv3x3('SAME') + global-average-pool into one [Cin*H*W, Cout] matrix.

    Valid only because the global pool precedes the ReLU and both the conv and
    the mean are linear:  mean_hw(conv(x)) == x_flat @ W_feat.
    Zero 'SAME' padding contributes nothing, so each (ki,kj) window sum is a
    sub-rectangle sum of the raw (unpadded) image -> 0/1 row/col indicators.
    """
    Cout, Cin, Kh, Kw = conv_w_oikk.shape
    pad = (Kh - 1) // 2
    r = jnp.arange(H)[:, None]
    ki = jnp.arange(Kh)[None, :]
    row_ind = ((ki - pad <= r) & (r < ki - pad + H)).astype(jnp.float32)   # [H, K]
    s = jnp.arange(W)[:, None]
    kj = jnp.arange(Kw)[None, :]
    col_ind = ((kj - pad <= s) & (s < kj - pad + W)).astype(jnp.float32)   # [W, K]
    w_feat = jnp.einsum("rk,sl,ockl->crso", row_ind, col_ind,
                        conv_w_oikk.astype(jnp.float32),
                        precision=jax.lax.Precision.HIGHEST) / float(H * W)
    return w_feat.reshape(Cin * H * W, Cout)                              # (c, r, s) rows


def prepare_params(raw, H, W):
    """Fold the backbone conv+GAP and cast everything to f32 once."""
    return dict(
        w_feat=fold_features_weight(raw["conv_w_oikk"], H, W),
        b_feat=raw["conv_b"].reshape(1, -1).astype(jnp.float32),
        w1=raw["w1"].astype(jnp.float32), b1=raw["b1"].astype(jnp.float32),
        w2=raw["w2"].astype(jnp.float32), b2=raw["b2"].astype(jnp.float32),
        w3=raw["w3"].astype(jnp.float32), b3=raw["b3"].astype(jnp.float32),
    )


# ----------------------------------------------------------------------------
# Fused kernel: features(x), features(y), cat, fcNet head — one launch
# ----------------------------------------------------------------------------
def _mynet_kernel(x_ref, y_ref, wf_ref, bf_ref, w1_ref, b1_ref,
                  w2_ref, b2_ref, w3_ref, b3_ref, o_ref, xy_scratch):
    """x_ref/y_ref: [B, Cin*H*W] flattened images.  o_ref: [B, num_classes]."""
    B = x_ref.shape[0]

    # --- ConvNet.features (folded conv3x3+GAP), both branches in one matmul ---
    xy_scratch[0:B, :] = x_ref[...]            # stack branches along M (sublanes)
    xy_scratch[B:2 * B, :] = y_ref[...]
    feat = jnp.dot(xy_scratch[...], wf_ref[...],
                   preferred_element_type=jnp.float32)        # [2B, Cout]
    feat = jnp.maximum(feat + bf_ref[...], 0.0)               # F.relu

    # --- MyNet: v = torch.cat((fx, fy), dim=1) — lane concat, stays in vregs ---
    v = jnp.concatenate([feat[:B, :], feat[B:, :]], axis=1)   # [B, 2*Cout]

    # --- fcNet classification head (Dropout = identity at eval) ---
    h1 = jnp.dot(v, w1_ref[...], preferred_element_type=jnp.float32) + b1_ref[...]
    h1 = jnp.maximum(h1, 0.0)
    h2 = jnp.dot(h1, w2_ref[...], preferred_element_type=jnp.float32) + b2_ref[...]
    h2 = jnp.maximum(h2, 0.0)
    o_ref[...] = (jnp.dot(h2, w3_ref[...], preferred_element_type=jnp.float32)
                  + b3_ref[...])


def mynet_forward(x, y, params, *, interpret=False):
    """MyNet.forward(x, y) with the default loss_fn='classification'.

    # TODO(synk): 'contrastive' / 'metric' loss paths are not implemented.
    """
    B, Cin, H, W = x.shape
    CHW = Cin * H * W
    wf = params["w_feat"]
    Cout = wf.shape[1]
    H1 = params["w1"].shape[1]
    H2 = params["w2"].shape[1]
    NC = params["w3"].shape[1]

    # Reshape of a contiguous NCHW tensor -> layout no-op, no host-side pad/stack.
    x_flat = x.reshape(B, CHW).astype(jnp.float32)
    y_flat = y.reshape(B, CHW).astype(jnp.float32)

    def full(shape):
        return pl.BlockSpec(shape, lambda i, _n=len(shape): (0,) * _n)

    return pl.pallas_call(
        _mynet_kernel,
        out_shape=jax.ShapeDtypeStruct((B, NC), jnp.float32),
        grid_spec=pltpu.PrefetchScalarGridSpec(
            num_scalar_prefetch=0,
            grid=(1,),                                     # single fused launch
            in_specs=[
                full((B, CHW)), full((B, CHW)),
                full((CHW, Cout)), full((1, Cout)),
                full((2 * Cout, H1)), full((1, H1)),
                full((H1, H2)), full((1, H2)),
                full((H2, NC)), full((1, NC)),
            ],
            out_specs=full((B, NC)),
            scratch_shapes=[pltpu.VMEM((2 * B, CHW), jnp.float32)],
        ),
        compiler_params=pltpu.CompilerParams(
            dimension_semantics=("arbitrary",)),
        interpret=interpret,
    )(x_flat, y_flat, wf, params["b_feat"],
      params["w1"], params["b1"], params["w2"], params["b2"],
      params["w3"], params["b3"])


# ----------------------------------------------------------------------------
# Plain-JAX reference for the whole forward pass
# ----------------------------------------------------------------------------
def _reference(x, y, raw):
    conv_w = raw["conv_w_oikk"]                # [Cout, Cin, K, K] (PyTorch layout)
    conv_b = raw["conv_b"]

    def features(img):
        img_nhwc = jnp.transpose(img, (0, 2, 3, 1)).astype(jnp.float32)
        w_hwio = jnp.transpose(conv_w, (2, 3, 1, 0))
        conv = jax.lax.conv_general_dilated(
            img_nhwc, w_hwio, window_strides=(1, 1), padding="SAME",
            dimension_numbers=("NHWC", "HWIO", "NHWC"),
            precision=jax.lax.Precision.HIGHEST)
        conv = conv + conv_b.reshape(1, 1, 1, -1)
        return jnp.maximum(jnp.mean(conv, axis=(1, 2)), 0.0)   # relu after GAP

    fx, fy = features(x), features(y)
    v = jnp.concatenate([fx, fy], axis=1)
    h1 = jnp.maximum(v @ raw["w1"] + raw["b1"], 0.0)
    h2 = jnp.maximum(h1 @ raw["w2"] + raw["b2"], 0.0)
    return h2 @ raw["w3"] + raw["b3"]


if __name__ == "__main__":
    key = jax.random.PRNGKey(0)
    kx, ky, kw, kb, k1, kb1, k2, kb2, k3, kb3 = jax.random.split(key, 10)

    # Small shapes consistent with MyNet: batch=2, 4-channel 16x16 images,
    # 32-feature placeholder backbone ("in_features[0]"), fcNet hidden 512/128,
    # 2 classes.
    B, Cin, H, W = 2, 4, 16, 16
    Cout = 32
    H1, H2, NC = 512, 128, 2

    x = jax.random.normal(kx, (B, Cin, H, W), dtype=jnp.float32)
    y = jax.random.normal(ky, (B, Cin, H, W), dtype=jnp.float32)

    raw = dict(
        # Synthetic backbone conv weight/bias in PyTorch layout [Cout, Cin, K, K].
        conv_w_oikk=jax.random.normal(kw, (Cout, Cin, K, K), dtype=jnp.float32) * 0.1,
        conv_b=jax.random.normal(kb, (Cout,), dtype=jnp.float32) * 0.1,
        # fcNet parameters stored as [in, out] (transposed nn.Linear layout).
        w1=jax.random.normal(k1, (2 * Cout, H1), dtype=jnp.float32) * 0.1,
        b1=jax.random.normal(kb1, (1, H1), dtype=jnp.float32) * 0.1,
        w2=jax.random.normal(k2, (H1, H2), dtype=jnp.float32) * 0.1,
        b2=jax.random.normal(kb2, (1, H2), dtype=jnp.float32) * 0.1,
        w3=jax.random.normal(k3, (H2, NC), dtype=jnp.float32) * 0.1,
        b3=jax.random.normal(kb3, (1, NC), dtype=jnp.float32) * 0.1,
    )

    params = prepare_params(raw, H, W)         # one-time fold, not per-forward

    out = mynet_forward(x, y, params)
    jax.block_until_ready(out)

    ref = _reference(x, y, raw)
    assert out.shape == (B, NC)
    max_err = float(jnp.max(jnp.abs(out - ref)))
    assert jnp.allclose(out, ref, atol=2e-4, rtol=2e-4), max_err

    print("KERNEL_OK")
</pallas_src>

<mosaic_0001>
module attributes {stable_mosaic.version = 11 : i64} {
  func.func @_mynet_kernel(%arg0: i32, %arg1: memref<2x1024xf32, #tpu.memory_space<vmem>>, %arg2: memref<2x1024xf32, #tpu.memory_space<vmem>>, %arg3: memref<1024x32xf32, #tpu.memory_space<vmem>>, %arg4: memref<1x32xf32, #tpu.memory_space<vmem>>, %arg5: memref<64x512xf32, #tpu.memory_space<vmem>>, %arg6: memref<1x512xf32, #tpu.memory_space<vmem>>, %arg7: memref<512x128xf32, #tpu.memory_space<vmem>>, %arg8: memref<1x128xf32, #tpu.memory_space<vmem>>, %arg9: memref<128x2xf32, #tpu.memory_space<vmem>>, %arg10: memref<1x2xf32, #tpu.memory_space<vmem>>, %arg11: memref<2x2xf32, #tpu.memory_space<vmem>>, %arg12: memref<4x1024xf32, #tpu.memory_space<vmem>>) attributes {dimension_semantics = [#tpu.dimension_semantics<arbitrary>], iteration_bounds = array<i64: 1>, scalar_prefetch = 0 : i64, scratch_operands = 1 : i64, tpu.core_type = #tpu.core_type<tc>, window_params = [{pipeline_mode = #tpu.pipeline_mode<synchronous>, transform_indices = @transform_0, window_bounds = array<i64: 2, 1024>}, {pipeline_mode = #tpu.pipeline_mode<synchronous>, transform_indices = @transform_1, window_bounds = array<i64: 2, 1024>}, {pipeline_mode = #tpu.pipeline_mode<synchronous>, transform_indices = @transform_2, window_bounds = array<i64: 1024, 32>}, {pipeline_mode = #tpu.pipeline_mode<synchronous>, transform_indices = @transform_3, window_bounds = array<i64: 1, 32>}, {pipeline_mode = #tpu.pipeline_mode<synchronous>, transform_indices = @transform_4, window_bounds = array<i64: 64, 512>}, {pipeline_mode = #tpu.pipeline_mode<synchronous>, transform_indices = @transform_5, window_bounds = array<i64: 1, 512>}, {pipeline_mode = #tpu.pipeline_mode<synchronous>, transform_indices = @transform_6, window_bounds = array<i64: 512, 128>}, {pipeline_mode = #tpu.pipeline_mode<synchronous>, transform_indices = @transform_7, window_bounds = array<i64: 1, 128>}, {pipeline_mode = #tpu.pipeline_mode<synchronous>, transform_indices = @transform_8, window_bounds = array<i64: 128, 2>}, {pipeline_mode = #tpu.pipeline_mode<synchronous>, transform_indices = @transform_9, window_bounds = array<i64: 1, 2>}, {pipeline_mode = #tpu.pipeline_mode<synchronous>, transform_indices = @transform_10, window_bounds = array<i64: 2, 2>}]} {
    %c0 = arith.constant 0 : index
    %c0_0 = arith.constant 0 : index
    %0 = vector.load %arg1[%c0, %c0_0] : memref<2x1024xf32, #tpu.memory_space<vmem>>, vector<2x1024xf32>
    %c0_1 = arith.constant 0 : index
    %c0_2 = arith.constant 0 : index
    %1 = vector.load %arg12[%c0_1, %c0_2] : memref<4x1024xf32, #tpu.memory_space<vmem>>, vector<2x1024xf32>
    tpu.vector_store %arg12[%c0_1, %c0_2], %0 {strides = array<i32>} : memref<4x1024xf32, #tpu.memory_space<vmem>>, vector<2x1024xf32>,
    %c0_3 = arith.constant 0 : index
    %c0_4 = arith.constant 0 : index
    %2 = vector.load %arg2[%c0_3, %c0_4] : memref<2x1024xf32, #tpu.memory_space<vmem>>, vector<2x1024xf32>
    %c2 = arith.constant 2 : index
    %c0_5 = arith.constant 0 : index
    %3 = vector.load %arg12[%c2, %c0_5] : memref<4x1024xf32, #tpu.memory_space<vmem>>, vector<2x1024xf32>
    tpu.vector_store %arg12[%c2, %c0_5], %2 {strides = array<i32>} : memref<4x1024xf32, #tpu.memory_space<vmem>>, vector<2x1024xf32>,
    %c0_6 = arith.constant 0 : index
    %c0_7 = arith.constant 0 : index
    %4 = vector.load %arg12[%c0_6, %c0_7] : memref<4x1024xf32, #tpu.memory_space<vmem>>, vector<4x1024xf32>
    %c0_8 = arith.constant 0 : index
    %c0_9 = arith.constant 0 : index
    %5 = vector.load %arg3[%c0_8, %c0_9] : memref<1024x32xf32, #tpu.memory_space<vmem>>, vector<1024x32xf32>
    %cst = arith.constant dense<0.000000e+00> : vector<4x32xf32>
    %6 = tpu.matmul %4, %5, %cst {dimension_numbers = #tpu.dot_dimension_numbers<[1], [0], [0], [1], [0, 0, 1, 1], [], []>} : vector<4x1024xf32>, vector<1024x32xf32>, vector<4x32xf32> -> vector<4x32xf32>
    %c0_10 = arith.constant 0 : index
    %c0_11 = arith.constant 0 : index
    %7 = vector.load %arg4[%c0_10, %c0_11] : memref<1x32xf32, #tpu.memory_space<vmem>>, vector<1x32xf32>
    %8 = vector.broadcast %7 : vector<1x32xf32> to vector<4x32xf32>
    %9 = arith.addf %6, %8 : vector<4x32xf32>
    %cst_12 = arith.constant 0.000000e+00 : f32
    %10 = vector.broadcast %cst_12 : f32 to vector<4x32xf32>
    %11 = arith.maximumf %9, %10 : vector<4x32xf32>
    %12 = vector.extract_strided_slice %11 {offsets = [0, 0], sizes = [2, 32], strides = [1, 1]} : vector<4x32xf32> to vector<2x32xf32>
    %13 = vector.extract_strided_slice %11 {offsets = [2, 0], sizes = [2, 32], strides = [1, 1]} : vector<4x32xf32> to vector<2x32xf32>
    %14 = tpu.concatenate %12, %13 in 1 : vector<2x32xf32>, vector<2x32xf32> -> vector<2x64xf32>
    %c0_13 = arith.constant 0 : index
    %c0_14 = arith.constant 0 : index
    %15 = vector.load %arg5[%c0_13, %c0_14] : memref<64x512xf32, #tpu.memory_space<vmem>>, vector<64x512xf32>
    %cst_15 = arith.constant dense<0.000000e+00> : vector<2x512xf32>
    %16 = tpu.matmul %14, %15, %cst_15 {dimension_numbers = #tpu.dot_dimension_numbers<[1], [0], [0], [1], [0, 0, 1, 1], [], []>} : vector<2x64xf32>, vector<64x512xf32>, vector<2x512xf32> -> vector<2x512xf32>
    %c0_16 = arith.constant 0 : index
    %c0_17 = arith.constant 0 : index
    %17 = vector.load %arg6[%c0_16, %c0_17] : memref<1x512xf32, #tpu.memory_space<vmem>>, vector<1x512xf32>
    %18 = vector.broadcast %17 : vector<1x512xf32> to vector<2x512xf32>
    %19 = arith.addf %16, %18 : vector<2x512xf32>
    %cst_18 = arith.constant 0.000000e+00 : f32
    %20 = vector.broadcast %cst_18 : f32 to vector<2x512xf32>
    %21 = arith.maximumf %19, %20 : vector<2x512xf32>
    %c0_19 = arith.constant 0 : index
    %c0_20 = arith.constant 0 : index
    %22 = vector.load %arg7[%c0_19, %c0_20] : memref<512x128xf32, #tpu.memory_space<vmem>>, vector<512x128xf32>
    %cst_21 = arith.constant dense<0.000000e+00> : vector<2x128xf32>
    %23 = tpu.matmul %21, %22, %cst_21 {dimension_numbers = #tpu.dot_dimension_numbers<[1], [0], [0], [1], [0, 0, 1, 1], [], []>} : vector<2x512xf32>, vector<512x128xf32>, vector<2x128xf32> -> vector<2x128xf32>
    %c0_22 = arith.constant 0 : index
    %c0_23 = arith.constant 0 : index
    %24 = vector.load %arg8[%c0_22, %c0_23] : memref<1x128xf32, #tpu.memory_space<vmem>>, vector<1x128xf32>
    %25 = vector.broadcast %24 : vector<1x128xf32> to vector<2x128xf32>
    %26 = arith.addf %23, %25 : vector<2x128xf32>
    %cst_24 = arith.constant 0.000000e+00 : f32
    %27 = vector.broadcast %cst_24 : f32 to vector<2x128xf32>
    %28 = arith.maximumf %26, %27 : vector<2x128xf32>
    %c0_25 = arith.constant 0 : index
    %c0_26 = arith.constant 0 : index
    %29 = vector.load %arg9[%c0_25, %c0_26] : memref<128x2xf32, #tpu.memory_space<vmem>>, vector<128x2xf32>
    %cst_27 = arith.constant dense<0.000000e+00> : vector<2x2xf32>
    %30 = tpu.matmul %28, %29, %cst_27 {dimension_numbers = #tpu.dot_dimension_numbers<[1], [0], [0], [1], [0, 0, 1, 1], [], []>} : vector<2x128xf32>, vector<128x2xf32>, vector<2x2xf32> -> vector<2x2xf32>
    %c0_28 = arith.constant 0 : index
    %c0_29 = arith.constant 0 : index
    %31 = vector.load %arg10[%c0_28, %c0_29] : memref<1x2xf32, #tpu.memory_space<vmem>>, vector<1x2xf32>
    %32 = vector.broadcast %31 : vector<1x2xf32> to vector<2x2xf32>
    %33 = arith.addf %30, %32 : vector<2x2xf32>
    %c0_30 = arith.constant 0 : index
    %c0_31 = arith.constant 0 : index
    %34 = vector.load %arg11[%c0_30, %c0_31] : memref<2x2xf32, #tpu.memory_space<vmem>>, vector<2x2xf32>
    tpu.vector_store %arg11[%c0_30, %c0_31], %33 {strides = array<i32>} : memref<2x2xf32, #tpu.memory_space<vmem>>, vector<2x2xf32>,
    return
  }
  func.func @transform_0(%arg0: i32) -> (i32, i32) {
    %c0_i32 = arith.constant 0 : i32
    %c0_i32_0 = arith.constant 0 : i32
    %c0_i32_1 = arith.constant 0 : i32
    return %c0_i32, %c0_i32_0 : i32, i32
  }
  func.func @transform_1(%arg0: i32) -> (i32, i32) {
    %c0_i32 = arith.constant 0 : i32
    %c0_i32_0 = arith.constant 0 : i32
    %c0_i32_1 = arith.constant 0 : i32
    return %c0_i32, %c0_i32_0 : i32, i32
  }
  func.func @transform_2(%arg0: i32) -> (i32, i32) {
    %c0_i32 = arith.constant 0 : i32
    %c0_i32_0 = arith.constant 0 : i32
    %c0_i32_1 = arith.constant 0 : i32
    return %c0_i32, %c0_i32_0 : i32, i32
  }
  func.func @transform_3(%arg0: i32) -> (i32, i32) {
    %c0_i32 = arith.constant 0 : i32
    %c0_i32_0 = arith.constant 0 : i32
    %c0_i32_1 = arith.constant 0 : i32
    return %c0_i32, %c0_i32_0 : i32, i32
  }
  func.func @transform_4(%arg0: i32) -> (i32, i32) {
    %c0_i32 = arith.constant 0 : i32
    %c0_i32_0 = arith.constant 0 : i32
    %c0_i32_1 = arith.constant 0 : i32
    return %c0_i32, %c0_i32_0 : i32, i32
  }
  func.func @transform_5(%arg0: i32) -> (i32, i32) {
    %c0_i32 = arith.constant 0 : i32
    %c0_i32_0 = arith.constant 0 : i32
    %c0_i32_1 = arith.constant 0 : i32
    return %c0_i32, %c0_i32_0 : i32, i32
  }
  func.func @transform_6(%arg0: i32) -> (i32, i32) {
    %c0_i32 = arith.constant 0 : i32
    %c0_i32_0 = arith.constant 0 : i32
    %c0_i32_1 = arith.constant 0 : i32
    return %c0_i32, %c0_i32_0 : i32, i32
  }
  func.func @transform_7(%arg0: i32) -> (i32, i32) {
    %c0_i32 = arith.constant 0 : i32
    %c0_i32_0 = arith.constant 0 : i32
    %c0_i32_1 = arith.constant 0 : i32
    return %c0_i32, %c0_i32_0 : i32, i32
  }
  func.func @transform_8(%arg0: i32) -> (i32, i32) {
    %c0_i32 = arith.constant 0 : i32
    %c0_i32_0 = arith.constant 0 : i32
    %c0_i32_1 = arith.constant 0 : i32
    return %c0_i32, %c0_i32_0 : i32, i32
  }
  func.func @transform_9(%arg0: i32) -> (i32, i32) {
    %c0_i32 = arith.constant 0 : i32
    %c0_i32_0 = arith.constant 0 : i32
    %c0_i32_1 = arith.constant 0 : i32
    return %c0_i32, %c0_i32_0 : i32, i32
  }
  func.func @transform_10(%arg0: i32) -> (i32, i32) {
    %c0_i32 = arith.constant 0 : i32
    %c0_i32_0 = arith.constant 0 : i32
    %c0_i32_1 = arith.constant 0 : i32
    return %c0_i32, %c0_i32_0 : i32, i32
  }
}

</mosaic_0001>

<bundles_post_ra>
// kernel: tpu_custom_call.1
= control target key start
LH: loop header
LB: loop body
LE: loop exit
PB: predicated region body
PF: predicated region fallthrough
CT: control target
= control target key end

     0   :  { %s1593_s0 = inlined_call_operand.vmem [shape: f32[2,1024], index: 0, kind: input, shape index: {}]   ;;  %s1594_s1 = inlined_call_operand.vmem [shape: f32[2,1024], index: 1, kind: input, shape index: {}]   ;;  %s1595_s2 = inlined_call_operand.vmem [shape: f32[1024,32], index: 2, kind: input, shape index: {}]   ;;  %s1596_s3 = inlined_call_operand.vmem [shape: f32[1,32], index: 3, kind: input, shape index: {}]   ;;  %s1597_s4 = inlined_call_operand.vmem [shape: f32[64,512], index: 4, kind: input, shape index: {}]   ;;  %s1598_s5 = inlined_call_operand.vmem [shape: f32[1,512], index: 5, kind: input, shape index: {}]   ;;  %s1599_s6 = inlined_call_operand.vmem [shape: f32[512,128], index: 6, kind: input, shape index: {}]   ;;  %s1600_s7 = inlined_call_operand.vmem [shape: f32[1,128], index: 7, kind: input, shape index: {}]   ;;  %s1601_s8 = inlined_call_operand.vmem [shape: f32[128,2], index: 8, kind: input, shape index: {}]   ;;  %s1602_s9 = inlined_call_operand.vmem [shape: f32[1,2], index: 9, kind: input, shape index: {}]   ;;  %s1603_s10 = inlined_call_operand.hbm [shape: f32[2,2], index: 10, kind: output, shape index: {}]  }
   0x1   :  { %v126_v0 = vld [vmem:[%s1595_s2 + $0x178] sm:$0xff]  ;;  %v125_v2 = vld [vmem:[%s1595_s2 + $0x170] sm:$0xff]  ;;  %v124_v6 = vld [vmem:[%s1595_s2 + $0x168] sm:$0xff] }
   0x2   :  { %v94_v1 = vld [vmem:[%s1595_s2 + $0x78] sm:$0xff]  ;;  %278 = vmatpush.msra.mxu2 %v126_v0  ;;  %v93_v4 = vld [vmem:[%s1595_s2 + $0x70] sm:$0xff]  ;;  %v92_v8 = vld [vmem:[%s1595_s2 + $0x68] sm:$0xff] }
   0x3   :  { %238 = vmatpush.msra.mxu0 %v94_v1  ;;  %v142_v3 = vld [vmem:[%s1595_s2 + $0x1f8] sm:$0xff]  ;;  %v141_v7 = vld [vmem:[%s1595_s2 + $0x1f0] sm:$0xff]  ;;  %v140_v10 = vld [vmem:[%s1595_s2 + $0x1e8] sm:$0xff] }
   0x4   :  { %v110_v5 = vld [vmem:[%s1595_s2 + $0xf8] sm:$0xff]  ;;  %298 = vmatpush.msra.mxu3 %v142_v3  ;;  %279 = vmatpush.msra.mxu2 %v125_v2  ;;  %v109_v9 = vld [vmem:[%s1595_s2 + $0xf0] sm:$0xff]  ;;  %v123_v11 = vld [vmem:[%s1595_s2 + $0x160] sm:$0xff] }
   0x5   :  { %258 = vmatpush.msra.mxu1 %v110_v5  ;;  %239 = vmatpush.msra.mxu0 %v93_v4  ;;  %v91_v12 = vld [vmem:[%s1595_s2 + $0x60] sm:$0xff]  ;;  %v108_v13 = vld [vmem:[%s1595_s2 + $0xe8] sm:$0xff]  ;;  %v122_v16 = vld [vmem:[%s1595_s2 + $0x158] sm:$0xff] }
   0x6   :  { %299 = vmatpush.msra.mxu3 %v141_v7  ;;  %280 = vmatpush.msra.mxu2 %v124_v6  ;;  %v139_v14 = vld [vmem:[%s1595_s2 + $0x1e0] sm:$0xff]  ;;  %v90_v17 = vld [vmem:[%s1595_s2 + $0x58] sm:$0xff]  ;;  %v121_v20 = vld [vmem:[%s1595_s2 + $0x150] sm:$0xff] }
   0x7   :  { %259 = vmatpush.msra.mxu1 %v109_v9  ;;  %240 = vmatpush.msra.mxu0 %v92_v8  ;;  %v107_v15 = vld [vmem:[%s1595_s2 + $0xe0] sm:$0xff]  ;;  %v138_v18 = vld [vmem:[%s1595_s2 + $0x1d8] sm:$0xff]  ;;  %v89_v21 = vld [vmem:[%s1595_s2 + $0x50] sm:$0xff] }
   0x8   :  { %300 = vmatpush.msra.mxu3 %v140_v10  ;;  %281 = vmatpush.msra.mxu2 %v123_v11  ;;  %v106_v19 = vld [vmem:[%s1595_s2 + $0xd8] sm:$0xff]  ;;  %v137_v22 = vld [vmem:[%s1595_s2 + $0x1d0] sm:$0xff]  ;;  %v120_v24 = vld [vmem:[%s1595_s2 + $0x148] sm:$0xff] }
   0x9   :  { %260 = vmatpush.msra.mxu1 %v108_v13  ;;  %241 = vmatpush.msra.mxu0 %v91_v12  ;;  %v105_v23 = vld [vmem:[%s1595_s2 + $0xd0] sm:$0xff]  ;;  %v88_v25 = vld [vmem:[%s1595_s2 + $0x48] sm:$0xff]  ;;  %v119_v28 = vld [vmem:[%s1595_s2 + $0x140] sm:$0xff] }
   0xa   :  { %301 = vmatpush.msra.mxu3 %v139_v14  ;;  %282 = vmatpush.msra.mxu2 %v122_v16  ;;  %v136_v26 = vld [vmem:[%s1595_s2 + $0x1c8] sm:$0xff]  ;;  %v87_v29 = vld [vmem:[%s1595_s2 + $0x40] sm:$0xff]  ;;  %v118_v32 = vld [vmem:[%s1595_s2 + $0x138] sm:$0xff] }
   0xb   :  { %261 = vmatpush.msra.mxu1 %v107_v15  ;;  %242 = vmatpush.msra.mxu0 %v90_v17  ;;  %v104_v27 = vld [vmem:[%s1595_s2 + $0xc8] sm:$0xff]  ;;  %v135_v30 = vld [vmem:[%s1595_s2 + $0x1c0] sm:$0xff]  ;;  %v86_v33 = vld [vmem:[%s1595_s2 + $0x38] sm:$0xff] }
   0xc   :  { %302 = vmatpush.msra.mxu3 %v138_v18  ;;  %283 = vmatpush.msra.mxu2 %v121_v20  ;;  %v103_v31 = vld [vmem:[%s1595_s2 + $0xc0] sm:$0xff]  ;;  %v134_v34 = vld [vmem:[%s1595_s2 + $0x1b8] sm:$0xff]  ;;  %v117_v36 = vld [vmem:[%s1595_s2 + $0x130] sm:$0xff] }
   0xd   :  { %262 = vmatpush.msra.mxu1 %v106_v19  ;;  %243 = vmatpush.msra.mxu0 %v89_v21  ;;  %v102_v35 = vld [vmem:[%s1595_s2 + $0xb8] sm:$0xff]  ;;  %v85_v37 = vld [vmem:[%s1595_s2 + $0x30] sm:$0xff]  ;;  %v116_v40 = vld [vmem:[%s1595_s2 + $0x128] sm:$0xff] }
   0xe   :  { %303 = vmatpush.msra.mxu3 %v137_v22  ;;  %284 = vmatpush.msra.mxu2 %v120_v24  ;;  %v133_v38 = vld [vmem:[%s1595_s2 + $0x1b0] sm:$0xff]  ;;  %v84_v41 = vld [vmem:[%s1595_s2 + $0x28] sm:$0xff]  ;;  %v115_v44 = vld [vmem:[%s1595_s2 + $0x120] sm:$0xff] }
   0xf   :  { %263 = vmatpush.msra.mxu1 %v105_v23  ;;  %244 = vmatpush.msra.mxu0 %v88_v25  ;;  %v101_v39 = vld [vmem:[%s1595_s2 + $0xb0] sm:$0xff]  ;;  %v132_v42 = vld [vmem:[%s1595_s2 + $0x1a8] sm:$0xff]  ;;  %v83_v45 = vld [vmem:[%s1595_s2 + $0x20] sm:$0xff] }
  0x10   :  { %304 = vmatpush.msra.mxu3 %v136_v26  ;;  %285 = vmatpush.msra.mxu2 %v119_v28  ;;  %v100_v43 = vld [vmem:[%s1595_s2 + $0xa8] sm:$0xff]  ;;  %v131_v46 = vld [vmem:[%s1595_s2 + $0x1a0] sm:$0xff]  ;;  %v114_v48 = vld [vmem:[%s1595_s2 + $0x118] sm:$0xff] }
  0x11   :  { %264 = vmatpush.msra.mxu1 %v104_v27  ;;  %245 = vmatpush.msra.mxu0 %v87_v29  ;;  %v99_v47 = vld [vmem:[%s1595_s2 + $0xa0] sm:$0xff]  ;;  %v82_v49 = vld [vmem:[%s1595_s2 + $0x18] sm:$0xff]  ;;  %v113_v52 = vld [vmem:[%s1595_s2 + $0x110] sm:$0xff] }
  0x12   :  { %305 = vmatpush.msra.mxu3 %v135_v30  ;;  %286 = vmatpush.msra.mxu2 %v118_v32  ;;  %v130_v50 = vld [vmem:[%s1595_s2 + $0x198] sm:$0xff]  ;;  %v81_v53 = vld [vmem:[%s1595_s2 + $0x10] sm:$0xff]  ;;  %v112_v56 = vld [vmem:[%s1595_s2 + $0x108] sm:$0xff] }
  0x13   :  { %265 = vmatpush.msra.mxu1 %v103_v31  ;;  %246 = vmatpush.msra.mxu0 %v86_v33  ;;  %v98_v51 = vld [vmem:[%s1595_s2 + $0x98] sm:$0xff]  ;;  %v129_v54 = vld [vmem:[%s1595_s2 + $0x190] sm:$0xff]  ;;  %v80_v57 = vld [vmem:[%s1595_s2 + $0x8] sm:$0xff] }
  0x14   :  { %306 = vmatpush.msra.mxu3 %v134_v34  ;;  %287 = vmatpush.msra.mxu2 %v117_v36  ;;  %v97_v55 = vld [vmem:[%s1595_s2 + $0x90] sm:$0xff]  ;;  %v128_v58 = vld [vmem:[%s1595_s2 + $0x188] sm:$0xff]  ;;  %v111_v60 = vld [vmem:[%s1595_s2 + $0x100] sm:$0xff] }
  0x15   :  { %266 = vmatpush.msra.mxu1 %v102_v35  ;;  %247 = vmatpush.msra.mxu0 %v85_v37  ;;  %v96_v59 = vld [vmem:[%s1595_s2 + $0x88] sm:$0xff]  ;;  %v79_v61 = vld [vmem:[%s1595_s2] sm:$0xff]  ;;  %v190_v62 = vld [vmem:[%s1595_s2 + $0x378] sm:$0xff] }
  0x16   :  { %307 = vmatpush.msra.mxu3 %v133_v38  ;;  %288 = vmatpush.msra.mxu2 %v116_v40  ;;  %v127_v63 = vld [vmem:[%s1595_s2 + $0x180] sm:$0xff]  ;;  %v158_v0 = vld [vmem:[%s1595_s2 + $0x278] sm:$0xff]  ;;  %v189_v2 = vld [vmem:[%s1595_s2 + $0x370] sm:$0xff] }
  0x17   :  { %267 = vmatpush.msra.mxu1 %v101_v39  ;;  %248 = vmatpush.msra.mxu0 %v84_v41  ;;  %v206_v1 = vld [vmem:[%s1595_s2 + $0x3f8] sm:$0xff]  ;;  %v95_v3 = vld [vmem:[%s1595_s2 + $0x80] sm:$0xff]  ;;  %v157_v4 = vld [vmem:[%s1595_s2 + $0x270] sm:$0xff] }
  0x18   :  { %308 = vmatpush.msra.mxu3 %v132_v42  ;;  %289 = vmatpush.msra.mxu2 %v115_v44  ;;  %v174_v5 = vld [vmem:[%s1595_s2 + $0x2f8] sm:$0xff]  ;;  %v188_v6 = vld [vmem:[%s1595_s2 + $0x368] sm:$0xff]  ;;  %v205_v7 = vld [vmem:[%s1595_s2 + $0x3f0] sm:$0xff] }
  0x19   :  { %268 = vmatpush.msra.mxu1 %v100_v43  ;;  %249 = vmatpush.msra.mxu0 %v83_v45  ;;  %v156_v8 = vld [vmem:[%s1595_s2 + $0x268] sm:$0xff]  ;;  %v173_v9 = vld [vmem:[%s1595_s2 + $0x2f0] sm:$0xff]  ;;  %v187_v10 = vld [vmem:[%s1595_s2 + $0x360] sm:$0xff] }
  0x1a   :  { %309 = vmatpush.msra.mxu3 %v131_v46  ;;  %290 = vmatpush.msra.mxu2 %v114_v48  ;;  %v204_v11 = vld [vmem:[%s1595_s2 + $0x3e8] sm:$0xff]  ;;  %v155_v12 = vld [vmem:[%s1595_s2 + $0x260] sm:$0xff]  ;;  %v186_v14 = vld [vmem:[%s1595_s2 + $0x358] sm:$0xff] }
  0x1b   :  { %269 = vmatpush.msra.mxu1 %v99_v47  ;;  %250 = vmatpush.msra.mxu0 %v82_v49  ;;  %v172_v13 = vld [vmem:[%s1595_s2 + $0x2e8] sm:$0xff]  ;;  %v203_v15 = vld [vmem:[%s1595_s2 + $0x3e0] sm:$0xff]  ;;  %v154_v18 = vld [vmem:[%s1595_s2 + $0x258] sm:$0xff] }
  0x1c   :  { %310 = vmatpush.msra.mxu3 %v130_v50  ;;  %291 = vmatpush.msra.mxu2 %v113_v52  ;;  %v36_v16 = vld [vmem:[%s1593_s0] sm:$0xff]  ;;  %v37_v17 = vld [vmem:[%s1593_s0 + $0x8] sm:$0xff]  ;;  %v185_v20 = vld [vmem:[%s1595_s2 + $0x350] sm:$0xff] }
  0x1d   :  { %270 = vmatpush.msra.mxu1 %v98_v51  ;;  %251 = vmatpush.msra.mxu0 %v81_v53  ;;  %v171_v19 = vld [vmem:[%s1595_s2 + $0x2e0] sm:$0xff]  ;;  %40 = vst [vmem:[#allocation1] ss:$2 sm:$0xff] %v36_v16  ;;  %v202_v21 = vld [vmem:[%s1595_s2 + $0x3d8] sm:$0xff] }
  0x1e   :  { %311 = vmatpush.msra.mxu3 %v129_v54  ;;  %292 = vmatpush.msra.mxu2 %v112_v56  ;;  %42 = vst [vmem:[#allocation1 + $0x10] ss:$2 sm:$0xff] %v37_v17 }
  0x1f   :  { %271 = vmatpush.msra.mxu1 %v97_v55  ;;  %252 = vmatpush.msra.mxu0 %v80_v57 }
  0x20   :  { %312 = vmatpush.msra.mxu3 %v128_v58  ;;  %293 = vmatpush.msra.mxu2 %v111_v60 }
  0x21   :  { %272 = vmatpush.msra.mxu1 %v96_v59  ;;  %253 = vmatpush.msra.mxu0 %v79_v61 }
  0x22   :  { %358 = vmatpush.msrb.mxu2 %v190_v62  ;;  %313 = vmatpush.msra.mxu3 %v127_v63 }
  0x23   :  { %318 = vmatpush.msrb.mxu0 %v158_v0  ;;  %273 = vmatpush.msra.mxu1 %v95_v3 }
  0x24   :  { %378 = vmatpush.msrb.mxu3 %v206_v1  ;;  %359 = vmatpush.msrb.mxu2 %v189_v2 }
  0x25   :  { %319 = vmatpush.msrb.mxu0 %v157_v4  ;;  %338 = vmatpush.msrb.mxu1 %v174_v5 }
  0x26   :  { %360 = vmatpush.msrb.mxu2 %v188_v6  ;;  %379 = vmatpush.msrb.mxu3 %v205_v7 }
  0x27   :  { %320 = vmatpush.msrb.mxu0 %v156_v8  ;;  %339 = vmatpush.msrb.mxu1 %v173_v9 }
  0x28   :  { %361 = vmatpush.msrb.mxu2 %v187_v10  ;;  %380 = vmatpush.msrb.mxu3 %v204_v11 }
  0x29   :  { %321 = vmatpush.msrb.mxu0 %v155_v12  ;;  %340 = vmatpush.msrb.mxu1 %v172_v13 }
  0x2a   :  { %15 = vsyncpa [#allocation4], 0  ;;  %362 = vmatpush.msrb.mxu2 %v186_v14  ;;  %381 = vmatpush.msrb.mxu3 %v203_v15  ;;  %v153_v22 = vld [vmem:[%s1595_s2 + $0x250] sm:$0xff]  ;;  %v170_v23 = vld [vmem:[%s1595_s2 + $0x2d8] sm:$0xff]  ;;  %s778_s13 = smov 32   ;;  %vm404_vm0 = vcmask 261120  }
  0x2b   :  { %322 = vmatpush.msrb.mxu0 %v154_v18  ;;  %341 = vmatpush.msrb.mxu1 %v171_v19  ;;  %v184_v24 = vld [vmem:[%s1595_s2 + $0x348] sm:$0xff]  ;;  %v201_v25 = vld [vmem:[%s1595_s2 + $0x3d0] sm:$0xff]  ;;  %v183_v28 = vld [vmem:[%s1595_s2 + $0x340] sm:$0xff]  ;;  %vm448_vm1 = vcmask 523264   ;;  %vm725_vm2 = vcmask 9216  }
  0x2c   :  { %v152_v26 = vld [vmem:[%s1595_s2 + $0x248] sm:$0xff]  ;;  %363 = vmatpush.msrb.mxu2 %v185_v20  ;;  %382 = vmatpush.msrb.mxu3 %v202_v21  ;;  %v169_v27 = vld [vmem:[%s1595_s2 + $0x2d0] sm:$0xff]  ;;  %v151_v30 = vld [vmem:[%s1595_s2 + $0x240] sm:$0xff] }
  0x2d   :  { %v200_v29 = vld [vmem:[%s1595_s2 + $0x3c8] sm:$0xff]  ;;  %323 = vmatpush.msrb.mxu0 %v153_v22  ;;  %342 = vmatpush.msrb.mxu1 %v170_v23  ;;  %v182_v32 = vld [vmem:[%s1595_s2 + $0x338] sm:$0xff]  ;;  %v199_v33 = vld [vmem:[%s1595_s2 + $0x3c0] sm:$0xff] }
  0x2e   :  { %v168_v31 = vld [vmem:[%s1595_s2 + $0x2c8] sm:$0xff]  ;;  %364 = vmatpush.msrb.mxu2 %v184_v24  ;;  %383 = vmatpush.msrb.mxu3 %v201_v25  ;;  %v150_v34 = vld [vmem:[%s1595_s2 + $0x238] sm:$0xff]  ;;  %v167_v35 = vld [vmem:[%s1595_s2 + $0x2c0] sm:$0xff] }
  0x2f   :  { %324 = vmatpush.msrb.mxu0 %v152_v26  ;;  %343 = vmatpush.msrb.mxu1 %v169_v27  ;;  %v181_v36 = vld [vmem:[%s1595_s2 + $0x330] sm:$0xff]  ;;  %v198_v37 = vld [vmem:[%s1595_s2 + $0x3b8] sm:$0xff]  ;;  %v43_v38 = vld.sshfl [vmem:[#allocation1] sm:$0xff pattern:$0x75643120] }
  0x30   :  { %v44_v39 = vld.sshfl [vmem:[#allocation1 + $0x8] sm:$0xff pattern:$0x75643120]  ;;  %365 = vmatpush.msrb.mxu2 %v183_v28  ;;  %384 = vmatpush.msrb.mxu3 %v200_v29  ;;  %v45_v40 = vld.sshfl [vmem:[#allocation1 + $0x10] sm:$0xff pattern:$0x75643120] }
  0x31   :  { %52 = vst [vmem:[#allocation2] sm:$0x33] %v44_v39  ;;  %v55_v41 = vld [vmem:[%s1594_s1] sm:$0xff]  ;;  %325 = vmatpush.msrb.mxu0 %v151_v30  ;;  %344 = vmatpush.msrb.mxu1 %v168_v31  ;;  %v46_v42 = vld.sshfl [vmem:[#allocation1 + $0x18] sm:$0xff pattern:$0x75643120] }
  0x32   :  { %53 = vst [vmem:[#allocation2 + $0x18] sm:$0x33] %v45_v40  ;;  %v56_v43 = vld [vmem:[%s1594_s1 + $0x8] sm:$0xff]  ;;  %366 = vmatpush.msrb.mxu2 %v182_v32  ;;  %385 = vmatpush.msrb.mxu3 %v199_v33  ;;  %v149_v44 = vld [vmem:[%s1595_s2 + $0x230] sm:$0xff]  ;;  %v166_v45 = vld [vmem:[%s1595_s2 + $0x2b8] sm:$0xff] }
  0x33   :  { %54 = vst [vmem:[#allocation2 + $0x8] sm:$0x33] %v46_v42  ;;  %326 = vmatpush.msrb.mxu0 %v150_v34  ;;  %345 = vmatpush.msrb.mxu1 %v167_v35  ;;  %v180_v46 = vld [vmem:[%s1595_s2 + $0x328] sm:$0xff]  ;;  %v197_v47 = vld [vmem:[%s1595_s2 + $0x3b0] sm:$0xff]  ;;  %v179_v50 = vld [vmem:[%s1595_s2 + $0x320] sm:$0xff] }
  0x34   :  { %60 = vst [vmem:[#allocation1 + $0x1] ss:$2 sm:$0xff] %v55_v41  ;;  %367 = vmatpush.msrb.mxu2 %v181_v36  ;;  %386 = vmatpush.msrb.mxu3 %v198_v37  ;;  %v148_v48 = vld [vmem:[%s1595_s2 + $0x228] sm:$0xff]  ;;  %v165_v49 = vld [vmem:[%s1595_s2 + $0x2b0] sm:$0xff]  ;;  %v147_v52 = vld [vmem:[%s1595_s2 + $0x220] sm:$0xff] }
  0x35   :  { %62 = vst [vmem:[#allocation1 + $0x11] ss:$2 sm:$0xff] %v56_v43  ;;  %327 = vmatpush.msrb.mxu0 %v149_v44  ;;  %346 = vmatpush.msrb.mxu1 %v166_v45  ;;  %v196_v51 = vld [vmem:[%s1595_s2 + $0x3a8] sm:$0xff]  ;;  %v178_v54 = vld [vmem:[%s1595_s2 + $0x318] sm:$0xff]  ;;  %v195_v55 = vld [vmem:[%s1595_s2 + $0x3a0] sm:$0xff] }
  0x36   :  { %51 = vst [vmem:[#allocation2 + $0x10] sm:$0x33] %v43_v38  ;;  %368 = vmatpush.msrb.mxu2 %v180_v46  ;;  %387 = vmatpush.msrb.mxu3 %v197_v47  ;;  %v164_v53 = vld [vmem:[%s1595_s2 + $0x2a8] sm:$0xff]  ;;  %v146_v56 = vld [vmem:[%s1595_s2 + $0x218] sm:$0xff]  ;;  %v163_v57 = vld [vmem:[%s1595_s2 + $0x2a0] sm:$0xff] }
  0x37   :  { %328 = vmatpush.msrb.mxu0 %v148_v48  ;;  %347 = vmatpush.msrb.mxu1 %v165_v49  ;;  %v177_v58 = vld [vmem:[%s1595_s2 + $0x310] sm:$0xff]  ;;  %v194_v59 = vld [vmem:[%s1595_s2 + $0x398] sm:$0xff]  ;;  %v176_v62 = vld [vmem:[%s1595_s2 + $0x308] sm:$0xff] }
  0x38   :  { %369 = vmatpush.msrb.mxu2 %v179_v50  ;;  %388 = vmatpush.msrb.mxu3 %v196_v51  ;;  %v145_v60 = vld [vmem:[%s1595_s2 + $0x210] sm:$0xff]  ;;  %v162_v61 = vld [vmem:[%s1595_s2 + $0x298] sm:$0xff]  ;;  %v144_v1 = vld [vmem:[%s1595_s2 + $0x208] sm:$0xff] }
  0x39   :  { %329 = vmatpush.msrb.mxu0 %v147_v52  ;;  %348 = vmatpush.msrb.mxu1 %v164_v53  ;;  %v193_v0 = vld [vmem:[%s1595_s2 + $0x390] sm:$0xff]  ;;  %v175_v6 = vld [vmem:[%s1595_s2 + $0x300] sm:$0xff]  ;;  %v192_v7 = vld [vmem:[%s1595_s2 + $0x388] sm:$0xff] }
  0x3a   :  { %370 = vmatpush.msrb.mxu2 %v178_v54  ;;  %389 = vmatpush.msrb.mxu3 %v195_v55  ;;  %v161_v5 = vld [vmem:[%s1595_s2 + $0x290] sm:$0xff]  ;;  %v143_v8 = vld [vmem:[%s1595_s2 + $0x200] sm:$0xff]  ;;  %v160_v9 = vld [vmem:[%s1595_s2 + $0x288] sm:$0xff] }
  0x3b   :  { %v64_v63 = vld.sshfl [vmem:[#allocation1 + $0x8] sm:$0xff pattern:$0x75643120]  ;;  %v63_v3 = vld.sshfl [vmem:[#allocation1] sm:$0xff pattern:$0x75643120]  ;;  %330 = vmatpush.msrb.mxu0 %v146_v56  ;;  %349 = vmatpush.msrb.mxu1 %v163_v57 }
  0x3c   :  { %v66_v2 = vld.sshfl [vmem:[#allocation1 + $0x18] sm:$0xff pattern:$0x75643120]  ;;  %v65_v4 = vld.sshfl [vmem:[#allocation1 + $0x10] sm:$0xff pattern:$0x75643120]  ;;  %371 = vmatpush.msrb.mxu2 %v177_v58  ;;  %390 = vmatpush.msrb.mxu3 %v194_v59 }
  0x3d   :  { %72 = vst [vmem:[#allocation2] sm:$0xcc] %v64_v63  ;;  %331 = vmatpush.msrb.mxu0 %v145_v60  ;;  %350 = vmatpush.msrb.mxu1 %v162_v61  ;;  %v191_v10 = vld [vmem:[%s1595_s2 + $0x380] sm:$0xff]  ;;  %v436_v26 = vld [vmem:[%s1597_s4 + $0xf0] sm:$0xff]  ;;  %v437_v27 = vld [vmem:[%s1597_s4 + $0xf8] sm:$0xff] }
  0x3e   :  { %73 = vst [vmem:[#allocation2 + $0x18] sm:$0xcc] %v65_v4  ;;  %372 = vmatpush.msrb.mxu2 %v176_v62  ;;  %391 = vmatpush.msrb.mxu3 %v193_v0  ;;  %v159_v11 = vld [vmem:[%s1595_s2 + $0x280] sm:$0xff]  ;;  %v432_v29 = vld [vmem:[%s1597_s4 + $0xd0] sm:$0xff]  ;;  %v433_v30 = vld [vmem:[%s1597_s4 + $0xd8] sm:$0xff] }
  0x3f   :  { %74 = vst [vmem:[#allocation2 + $0x8] sm:$0xcc] %v66_v2  ;;  %332 = vmatpush.msrb.mxu0 %v144_v1  ;;  %351 = vmatpush.msrb.mxu1 %v161_v5  ;;  %v434_v24 = vld [vmem:[%s1597_s4 + $0xe0] sm:$0xff]  ;;  %v428_v31 = vld [vmem:[%s1597_s4 + $0xb0] sm:$0xff]  ;;  %v429_v32 = vld [vmem:[%s1597_s4 + $0xb8] sm:$0xff] }
  0x40   :  { %71 = vst [vmem:[#allocation2 + $0x10] sm:$0xcc] %v63_v3  ;;  %373 = vmatpush.msrb.mxu2 %v175_v6  ;;  %392 = vmatpush.msrb.mxu3 %v192_v7  ;;  %v430_v25 = vld [vmem:[%s1597_s4 + $0xc0] sm:$0xff]  ;;  %v424_v34 = vld [vmem:[%s1597_s4 + $0x90] sm:$0xff]  ;;  %v425_v35 = vld [vmem:[%s1597_s4 + $0x98] sm:$0xff] }
  0x41   :  { %333 = vmatpush.msrb.mxu0 %v143_v8  ;;  %352 = vmatpush.msrb.mxu1 %v160_v9  ;;  %v426_v28 = vld [vmem:[%s1597_s4 + $0xa0] sm:$0xff]  ;;  %v420_v37 = vld [vmem:[%s1597_s4 + $0x70] sm:$0xff]  ;;  %v421_v38 = vld [vmem:[%s1597_s4 + $0x78] sm:$0xff] }
  0x42   :  { %393 = vmatpush.msrb.mxu3 %v191_v10  ;;  %v422_v33 = vld [vmem:[%s1597_s4 + $0x80] sm:$0xff]  ;;  %v416_v41 = vld [vmem:[%s1597_s4 + $0x50] sm:$0xff]  ;;  %v417_v42 = vld [vmem:[%s1597_s4 + $0x58] sm:$0xff] }
  0x43   :  { %353 = vmatpush.msrb.mxu1 %v159_v11  ;;  %v418_v36 = vld [vmem:[%s1597_s4 + $0x60] sm:$0xff]  ;;  %v412_v46 = vld [vmem:[%s1597_s4 + $0x30] sm:$0xff]  ;;  %v413_v47 = vld [vmem:[%s1597_s4 + $0x38] sm:$0xff] }
  0x44   :  { %v76_v12 = vld [vmem:[#allocation2] sm:$0xff]  ;;  %v749_v39 = vld [vmem:[%s1596_s3] ss:$0 sm:$0xff]  ;;  %v408_v5 = vld [vmem:[%s1597_s4 + $0x10] sm:$0xff] }
  0x45   :  { %217 = vst [vmem:[#allocation1 + $0x10] ss:$2 sm:$0xff] %v76_v12  ;;  %v77_v13 = vld [vmem:[#allocation2 + $0x18] sm:$0xff]  ;;  %v435_v50 = vld [vmem:[%s1597_s4 + $0xe8] sm:$0xff]  ;;  %v409_v6 = vld [vmem:[%s1597_s4 + $0x18] sm:$0xff] }
  0x46   :  { %v78_v14 = vld [vmem:[#allocation2 + $0x8] sm:$0xff]  ;;  %219 = vst [vmem:[#allocation1 + $0x20] ss:$2 sm:$0xff] %v77_v13  ;;  %v414_v40 = vld [vmem:[%s1597_s4 + $0x40] sm:$0xff]  ;;  %v431_v54 = vld [vmem:[%s1597_s4 + $0xc8] sm:$0xff] }
  0x47   :  { %v75_v15 = vld [vmem:[#allocation2 + $0x10] sm:$0xff]  ;;  %221 = vst [vmem:[#allocation1 + $0x30] ss:$2 sm:$0xff] %v78_v14  ;;  %v410_v43 = vld [vmem:[%s1597_s4 + $0x20] sm:$0xff]  ;;  %v427_v56 = vld [vmem:[%s1597_s4 + $0xa8] sm:$0xff] }
  0x48   :  { %215 = vst [vmem:[#allocation1] ss:$2 sm:$0xff] %v75_v15  ;;  %v406_v49 = vld [vmem:[%s1597_s4] sm:$0xff]  ;;  %v423_v4 = vld [vmem:[%s1597_s4 + $0x88] sm:$0xff]  ;;  %v551_v11 = vld [vmem:[%s1599_s6 + $0x78] sm:$0xff] }
  0x49   :  { %v419_v7 = vld [vmem:[%s1597_s4 + $0x68] sm:$0xff]  ;;  %v550_v12 = vld [vmem:[%s1599_s6 + $0x70] sm:$0xff]  ;;  %v583_v13 = vld [vmem:[%s1599_s6 + $0x178] sm:$0xff] }
  0x4a   :  { %v415_v8 = vld [vmem:[%s1597_s4 + $0x48] sm:$0xff]  ;;  %v599_v14 = vld [vmem:[%s1599_s6 + $0x1f8] sm:$0xff] }
  0x4b   :  { %v411_v9 = vld [vmem:[%s1597_s4 + $0x28] sm:$0xff] }
  0x4c   :  { %v224_v16 = vld.sshfl [vmem:[#allocation1 + $0x10] sm:$0xff pattern:$0x75316420]  ;;  %v225_v17 = vld.sshfl [vmem:[#allocation1 + $0x18] sm:$0xff pattern:$0x75316420] }
  0x4d   :  { %294 = vmatmul.f32.vlgmr.msra.gmra.mxu2 %v224_v16  ;;  %314 = vmatmul.f32.vlgmr.msra.gmra.mxu3 %v225_v17  ;;  %v226_v22 = vld.sshfl [vmem:[#allocation1 + $0x20] sm:$0xff pattern:$0x75316420]  ;;  %v227_v23 = vld.sshfl [vmem:[#allocation1 + $0x28] sm:$0xff pattern:$0x75316420] }
  0x4e   :  { %v228_v20 = vld.sshfl [vmem:[#allocation1 + $0x30] sm:$0xff pattern:$0x75316420]  ;;  %v229_v21 = vld.sshfl [vmem:[#allocation1 + $0x38] sm:$0xff pattern:$0x75316420]  ;;  %500 = vmatpush.msra.mxu2 %v436_v26  ;;  %520 = vmatpush.msra.mxu3 %v437_v27 }
  0x4f   :  { %v222_v18 = vld.sshfl [vmem:[#allocation1] sm:$0xff pattern:$0x75316420]  ;;  %v223_v19 = vld.sshfl [vmem:[#allocation1 + $0x8] sm:$0xff pattern:$0x75316420] }
  0x50   :  { %254 = vmatmul.f32.vlgmr.msra.gmra.mxu0 %v222_v18  ;;  %274 = vmatmul.f32.vlgmr.msra.gmra.mxu1 %v223_v19  ;;  %v407_v10 = vld [vmem:[%s1597_s4 + $0x8] sm:$0xff]  ;;  %v582_v16 = vld [vmem:[%s1599_s6 + $0x170] sm:$0xff]  ;;  %v548_v18 = vld [vmem:[%s1599_s6 + $0x60] sm:$0xff] }
  0x51   :  { %460 = vmatpush.msra.mxu1 %v434_v24  ;;  %501 = vmatpush.msra.mxu2 %v432_v29  ;;  %v549_v15 = vld [vmem:[%s1599_s6 + $0x68] sm:$0xff]  ;;  %v598_v17 = vld [vmem:[%s1599_s6 + $0x1f0] sm:$0xff]  ;;  %v579_v24 = vld [vmem:[%s1599_s6 + $0x158] sm:$0xff] }
  0x52   :  { %521 = vmatpush.msra.mxu3 %v433_v30  ;;  %604 = vmatpush.msra.mxu0 %v551_v11  ;;  %v581_v19 = vld [vmem:[%s1599_s6 + $0x168] sm:$0xff]  ;;  %v546_v26 = vld [vmem:[%s1599_s6 + $0x50] sm:$0xff]  ;;  %v584_v11 = vld [vmem:[%s1599_s6 + $0x180] sm:$0xff] }
  0x53   :  { %461 = vmatpush.msra.mxu1 %v430_v25  ;;  %502 = vmatpush.msra.mxu2 %v428_v31  ;;  %v595_v25 = vld [vmem:[%s1599_s6 + $0x1d8] sm:$0xff]  ;;  %v578_v27 = vld [vmem:[%s1599_s6 + $0x150] sm:$0xff]  ;;  %v545_v29 = vld [vmem:[%s1599_s6 + $0x48] sm:$0xff] }
  0x54   :  { %522 = vmatpush.msra.mxu3 %v429_v32  ;;  %605 = vmatpush.msra.mxu0 %v550_v12  ;;  %v577_v30 = vld [vmem:[%s1599_s6 + $0x148] sm:$0xff]  ;;  %v544_v32 = vld [vmem:[%s1599_s6 + $0x40] sm:$0xff] }
  0x55   :  { %374 = vmatmul.f32.vlgmr.msrb.gmra.mxu2 %v228_v20  ;;  %394 = vmatmul.f32.vlgmr.msrb.gmra.mxu3 %v229_v21  ;;  %v597_v20 = vld [vmem:[%s1599_s6 + $0x1e8] sm:$0xff]  ;;  %v580_v21 = vld [vmem:[%s1599_s6 + $0x160] sm:$0xff] }
  0x56   :  { %462 = vmatpush.msra.mxu1 %v426_v28  ;;  %503 = vmatpush.msra.mxu2 %v424_v34  ;;  %v594_v28 = vld [vmem:[%s1599_s6 + $0x1d0] sm:$0xff]  ;;  %v593_v31 = vld [vmem:[%s1599_s6 + $0x1c8] sm:$0xff]  ;;  %v592_v34 = vld [vmem:[%s1599_s6 + $0x1c0] sm:$0xff] }
  0x57   :  { %523 = vmatpush.msra.mxu3 %v425_v35  ;;  %606 = vmatpush.msra.mxu0 %v549_v15  ;;  %v543_v35 = vld [vmem:[%s1599_s6 + $0x38] sm:$0xff]  ;;  %v552_v12 = vld [vmem:[%s1599_s6 + $0x80] sm:$0xff]  ;;  %v698_v15 = vld [vmem:[%s1601_s8 + $0x68] sm:$0xff] }
  0x58   :  { %334 = vmatmul.f32.vlgmr.msrb.gmra.mxu0 %v226_v22  ;;  %354 = vmatmul.f32.vlgmr.msrb.gmra.mxu1 %v227_v23  ;;  %v596_v22 = vld [vmem:[%s1599_s6 + $0x1e0] sm:$0xff]  ;;  %v547_v23 = vld [vmem:[%s1599_s6 + $0x58] sm:$0xff] }
  0x59   :  { %463 = vmatpush.msra.mxu1 %v422_v33  ;;  %504 = vmatpush.msra.mxu2 %v420_v37  ;;  %v576_v33 = vld [vmem:[%s1599_s6 + $0x140] sm:$0xff]  ;;  %v591_v37 = vld [vmem:[%s1599_s6 + $0x1b8] sm:$0xff] }
  0x5a   :  { %524 = vmatpush.msra.mxu3 %v421_v38  ;;  %607 = vmatpush.msra.mxu0 %v548_v18  ;;  %v542_v38 = vld [vmem:[%s1599_s6 + $0x30] sm:$0xff] }
  0x5b   :  { %464 = vmatpush.msra.mxu1 %v418_v36  ;;  %505 = vmatpush.msra.mxu2 %v416_v41  ;;  %v575_v36 = vld [vmem:[%s1599_s6 + $0x138] sm:$0xff]  ;;  %v541_v41 = vld [vmem:[%s1599_s6 + $0x28] sm:$0xff]  ;;  %v695_v18 = vld [vmem:[%s1601_s8 + $0x50] sm:$0xff] }
  0x5c   :  { %525 = vmatpush.msra.mxu3 %v417_v42  ;;  %608 = vmatpush.msra.mxu0 %v547_v23  ;;  %v540_v42 = vld [vmem:[%s1599_s6 + $0x20] sm:$0xff] }
  0x5d   :  { %465 = vmatpush.msra.mxu1 %v414_v40  ;;  %506 = vmatpush.msra.mxu2 %v412_v46  ;;  %v590_v40 = vld [vmem:[%s1599_s6 + $0x1b0] sm:$0xff]  ;;  %v539_v46 = vld [vmem:[%s1599_s6 + $0x18] sm:$0xff] }
  0x5e   :  { %526 = vmatpush.msra.mxu3 %v413_v47  ;;  %609 = vmatpush.msra.mxu0 %v546_v26  ;;  %v566_v47 = vld [vmem:[%s1599_s6 + $0xf0] sm:$0xff] }
  0x5f   :  { %466 = vmatpush.msra.mxu1 %v410_v43  ;;  %507 = vmatpush.msra.mxu2 %v408_v5  ;;  %v586_v5 = vld [vmem:[%s1599_s6 + $0x190] sm:$0xff] }
  0x60   :  { %527 = vmatpush.msra.mxu3 %v409_v6  ;;  %610 = vmatpush.msra.mxu0 %v545_v29  ;;  %v554_v6 = vld [vmem:[%s1599_s6 + $0x90] sm:$0xff] }
  0x61   :  { %467 = vmatpush.msra.mxu1 %v406_v49  ;;  %644 = vmatpush.msrb.mxu2 %v583_v13  ;;  %v564_v49 = vld [vmem:[%s1599_s6 + $0xe0] sm:$0xff]  ;;  %v700_v13 = vld [vmem:[%s1601_s8 + $0x78] sm:$0xff] }
  0x62   :  { %664 = vmatpush.msrb.mxu3 %v599_v14  ;;  %611 = vmatpush.msra.mxu0 %v544_v32  ;;  %v699_v14 = vld [vmem:[%s1601_s8 + $0x70] sm:$0xff] }
  0x63   :  { %480 = vmatpush.msrb.mxu1 %v435_v50  ;;  %645 = vmatpush.msrb.mxu2 %v582_v16  ;;  %v563_v50 = vld [vmem:[%s1599_s6 + $0xd8] sm:$0xff]  ;;  %v697_v16 = vld [vmem:[%s1601_s8 + $0x60] sm:$0xff] }
  0x64   :  { %665 = vmatpush.msrb.mxu3 %v598_v17  ;;  %612 = vmatpush.msra.mxu0 %v543_v35  ;;  %v696_v17 = vld [vmem:[%s1601_s8 + $0x58] sm:$0xff] }
  0x65   :  { %481 = vmatpush.msrb.mxu1 %v431_v54  ;;  %646 = vmatpush.msrb.mxu2 %v581_v19  ;;  %v559_v54 = vld [vmem:[%s1599_s6 + $0xb8] sm:$0xff]  ;;  %v438_v19 = vld [vmem:[%s1598_s5] sm:$0xf] }
  0x66   :  { %666 = vmatpush.msrb.mxu3 %v597_v20  ;;  %613 = vmatpush.msra.mxu0 %v542_v38  ;;  %v440_v20 = vperm.slane %v438_v19, 0  ;;  %v441_v26 = vperm.slane %v438_v19, 1  ;;  %v692_v38 = vld [vmem:[%s1601_s8 + $0x38] sm:$0xff] }
  0x67   :  { %482 = vmatpush.msrb.mxu1 %v427_v56  ;;  %647 = vmatpush.msrb.mxu2 %v580_v21  ;;  %v558_v56 = vld [vmem:[%s1599_s6 + $0xb0] sm:$0xff] }
  0x68   :  { %667 = vmatpush.msrb.mxu3 %v596_v22  ;;  %614 = vmatpush.msra.mxu0 %v541_v41  ;;  %v689_v41 = vld [vmem:[%s1601_s8 + $0x20] sm:$0xff] }
  0x69   :  { %483 = vmatpush.msrb.mxu1 %v423_v4  ;;  %648 = vmatpush.msrb.mxu2 %v579_v24  ;;  %v570_v4 = vld [vmem:[%s1599_s6 + $0x110] sm:$0xff]  ;;  %v442_v24 = vperm.slane %v438_v19, 2 }
  0x6a   :  { %668 = vmatpush.msrb.mxu3 %v595_v25  ;;  %615 = vmatpush.msra.mxu0 %v540_v42  ;;  %v443_v25 = vperm.slane %v438_v19, 3  ;;  %v688_v42 = vld [vmem:[%s1601_s8 + $0x18] sm:$0xff] }
  0x6b   :  { %484 = vmatpush.msrb.mxu1 %v419_v7  ;;  %649 = vmatpush.msrb.mxu2 %v578_v27  ;;  %v569_v7 = vld [vmem:[%s1599_s6 + $0x108] sm:$0xff] }
  0x6c   :  { %669 = vmatpush.msrb.mxu3 %v594_v28  ;;  %616 = vmatpush.msra.mxu0 %v539_v46  ;;  %v750_v46 = vld [vmem:[%s1600_s7] ss:$0 sm:$0xff]  ;;  %s734_s7 = sshll.u32 %s1603_s10, 4  ;;  %s735_s7 = int_to_ptr.hbm [resolvable:$true] %s734_s7 }
  0x6d   :  { %485 = vmatpush.msrb.mxu1 %v415_v8  ;;  %650 = vmatpush.msrb.mxu2 %v577_v30  ;;  %v585_v8 = vld [vmem:[%s1599_s6 + $0x188] sm:$0xff] }
  0x6e   :  { %670 = vmatpush.msrb.mxu3 %v593_v31 }
  0x6f   :  { %486 = vmatpush.msrb.mxu1 %v411_v9  ;;  %651 = vmatpush.msrb.mxu2 %v576_v33  ;;  %v553_v9 = vld [vmem:[%s1599_s6 + $0x88] sm:$0xff] }
  0x70   :  { %671 = vmatpush.msrb.mxu3 %v592_v34 }
  0x71   :  { %487 = vmatpush.msrb.mxu1 %v407_v10  ;;  %652 = vmatpush.msrb.mxu2 %v575_v36  ;;  %v568_v10 = vld [vmem:[%s1599_s6 + $0x100] sm:$0xff]  ;;  %v694_v36 = vld [vmem:[%s1601_s8 + $0x48] sm:$0xff] }
  0x72   :  { %672 = vmatpush.msrb.mxu3 %v591_v37  ;;  %v693_v37 = vld [vmem:[%s1601_s8 + $0x40] sm:$0xff] }
  0x74   :  { %673 = vmatpush.msrb.mxu3 %v590_v40  ;;  %v690_v40 = vld [vmem:[%s1601_s8 + $0x28] sm:$0xff] }
  0xcd   :  { %v255_v44 = vpop.f32.mrf.mxu0  ;;  %v275_v45 = vpop.f32.mrf.mxu1 }
  0xce   :  { %v256_v48 = vadd.f32 %v749_v39, %v255_v44  ;;  %v574_v39 = vld [vmem:[%s1599_s6 + $0x130] sm:$0xff]  ;;  %v567_v44 = vld [vmem:[%s1599_s6 + $0xf8] sm:$0xff] }
  0xcf   :  { %653 = vmatpush.msrb.mxu2 %v574_v39  ;;  %v691_v39 = vld [vmem:[%s1601_s8 + $0x30] sm:$0xff] }
  0xd0   :  { %v276_v51 = vadd.f32 %v275_v45, %v256_v48  ;;  %v295_v52 = vpop.f32.mrf.mxu2  ;;  %v315_v53 = vpop.f32.mrf.mxu3  ;;  %v565_v48 = vld [vmem:[%s1599_s6 + $0xe8] sm:$0xff] }
  0xd2   :  { %v296_v55 = vadd.f32 %v295_v52, %v276_v51  ;;  %v562_v51 = vld [vmem:[%s1599_s6 + $0xd0] sm:$0xff]  ;;  %v561_v52 = vld [vmem:[%s1599_s6 + $0xc8] sm:$0xff] }
  0xd4   :  { %v316_v57 = vadd.f32 %v315_v53, %v296_v55  ;;  %v560_v53 = vld [vmem:[%s1599_s6 + $0xc0] sm:$0xff]  ;;  %v538_v55 = vld [vmem:[%s1599_s6 + $0x10] sm:$0xff] }
  0xd5   :  { %v335_v58 = vpop.f32.mrf.mxu0  ;;  %v355_v59 = vpop.f32.mrf.mxu1  ;;  %617 = vmatpush.msra.mxu0 %v538_v55 }
  0xd6   :  { %v336_v60 = vadd.f32 %v335_v58, %v316_v57  ;;  %v573_v57 = vld [vmem:[%s1599_s6 + $0x128] sm:$0xff] }
  0xd7   :  { %v589_v58 = vld [vmem:[%s1599_s6 + $0x1a8] sm:$0xff]  ;;  %654 = vmatpush.msrb.mxu2 %v573_v57 }
  0xd8   :  { %v356_v61 = vadd.f32 %v355_v59, %v336_v60  ;;  %v375_v62 = vpop.f32.mrf.mxu2  ;;  %v395_v63 = vpop.f32.mrf.mxu3  ;;  %674 = vmatpush.msrb.mxu3 %v589_v58  ;;  %v537_v59 = vld [vmem:[%s1599_s6 + $0x8] sm:$0xff] }
  0xd9   :  { %v557_v60 = vld [vmem:[%s1599_s6 + $0xa8] sm:$0xff]  ;;  %618 = vmatpush.msra.mxu0 %v537_v59 }
  0xda   :  { %v376_v0 = vadd.f32 %v375_v62, %v356_v61  ;;  %v572_v61 = vld [vmem:[%s1599_s6 + $0x120] sm:$0xff] }
  0xdb   :  { %v588_v62 = vld [vmem:[%s1599_s6 + $0x1a0] sm:$0xff]  ;;  %655 = vmatpush.msrb.mxu2 %v572_v61 }
  0xdc   :  { %v1309_v1 = vadd.f32 %v395_v63, %v376_v0  ;;  %v536_v63 = vld [vmem:[%s1599_s6] sm:$0xff]  ;;  %675 = vmatpush.msrb.mxu3 %v588_v62 }
  0xdd   :  { %v556_v0 = vld [vmem:[%s1599_s6 + $0xa0] sm:$0xff]  ;;  %619 = vmatpush.msra.mxu0 %v536_v63 }
  0xde   :  { %v398_v2 = vmax.f32 %v1309_v1, 0.0  ;;  %v571_v1 = vld [vmem:[%s1599_s6 + $0x118] sm:$0xff] }
  0xdf   :  { %656 = vmatpush.msrb.mxu2 %v571_v1  ;;  %705 = vmatpush.msrb.mxu0 %v700_v13 }
  0xe0   :  { %v400_v3 = vrot.slane %v398_v2, 2 }
  0xe1   :  { %657 = vmatpush.msrb.mxu2 %v570_v4  ;;  %706 = vmatpush.msrb.mxu0 %v699_v14 }
  0xe2   :  { %401 = vrot.lane.b32.xlu0 %v400_v3, %s778_s13  ;;  %v555_v3 = vld [vmem:[%s1599_s6 + $0x98] sm:$0xff] }
  0xe3   :  { %658 = vmatpush.msrb.mxu2 %v569_v7  ;;  %707 = vmatpush.msrb.mxu0 %v698_v15 }
  0xe5   :  { %659 = vmatpush.msrb.mxu2 %v568_v10  ;;  %708 = vmatpush.msrb.mxu0 %v697_v16 }
  0xe7   :  { %709 = vmatpush.msrb.mxu0 %v696_v17 }
  0xe9   :  { %710 = vmatpush.msrb.mxu0 %v695_v18 }
  0xeb   :  { %711 = vmatpush.msrb.mxu0 %v694_v36 }
  0xed   :  { %712 = vmatpush.msrb.mxu0 %v693_v37 }
  0xef   :  { %713 = vmatpush.msrb.mxu0 %v692_v38 }
  0xf1   :  { %714 = vmatpush.msrb.mxu0 %v691_v39 }
  0xf3   :  { %715 = vmatpush.msrb.mxu0 %v690_v40 }
  0xf5   :  { %716 = vmatpush.msrb.mxu0 %v689_v41 }
  0xf7   :  { %717 = vmatpush.msrb.mxu0 %v688_v42 }
 0x154   :  { %v402_v43 = vpop.permute.xlu0 %401 }
 0x155   :  { %v405_v45 = vsel %vm404_vm0, %v398_v2, %v402_v43  ;;  %v587_v2 = vld [vmem:[%s1599_s6 + $0x198] sm:$0xff]  ;;  %v687_v43 = vld [vmem:[%s1601_s8 + $0x10] sm:$0xff] }
 0x156   :  { %743 = vmatmul.msk.f32.vlgmr.msra.gmra.mxu1 %vm448_vm1, %v405_v45  ;;  %745 = vmatmul.msk.f32.vlgmr.msra.gmra.mxu2 %vm448_vm1, %v405_v45 }
 0x157   :  { %746 = vmatmul.msk.f32.vlgmr.msra.gmra.mxu3 %vm448_vm1, %v405_v45  ;;  %624 = vmatpush.msra.mxu1 %v567_v44  ;;  %v686_v44 = vld [vmem:[%s1601_s8 + $0x8] sm:$0xff] }
 0x158   :  { %676 = vmatpush.msrb.mxu3 %v587_v2  ;;  %718 = vmatpush.msrb.mxu0 %v687_v43 }
 0x159   :  { %625 = vmatpush.msra.mxu1 %v566_v47 }
 0x15a   :  { %677 = vmatpush.msrb.mxu3 %v586_v5  ;;  %719 = vmatpush.msrb.mxu0 %v686_v44 }
 0x15b   :  { %626 = vmatpush.msra.mxu1 %v565_v48 }
 0x15c   :  { %678 = vmatpush.msrb.mxu3 %v585_v8 }
 0x15d   :  { %627 = vmatpush.msra.mxu1 %v564_v49 }
 0x15e   :  { %744 = vmatmul.msk.f32.vlgmr.msrb.gmra.mxu1 %vm448_vm1, %v405_v45  ;;  %679 = vmatpush.msrb.mxu3 %v584_v11  ;;  %v685_v45 = vld [vmem:[%s1601_s8] sm:$0xff]  ;;  %s779_s8 = smov [#allocation3]  }
 0x15f   :  { %628 = vmatpush.msra.mxu1 %v563_v50  ;;  %720 = vmatpush.msrb.mxu0 %v685_v45  ;;  %s732_s16 = sshll.u32 %s779_s8, 4  ;;  %s733_s16 = int_to_ptr.vmem [resolvable:$true] %s732_s16 }
 0x161   :  { %629 = vmatpush.msra.mxu1 %v562_v51 }
 0x163   :  { %630 = vmatpush.msra.mxu1 %v561_v52 }
 0x165   :  { %631 = vmatpush.msra.mxu1 %v560_v53 }
 0x167   :  { %632 = vmatpush.msra.mxu1 %v559_v54 }
 0x169   :  { %633 = vmatpush.msra.mxu1 %v558_v56  ;;  %v751_v56 = vld [vmem:[%s1602_s9] ss:$0 sm:$0xff] }
 0x16b   :  { %634 = vmatpush.msra.mxu1 %v557_v60 }
 0x16d   :  { %635 = vmatpush.msra.mxu1 %v556_v0 }
 0x16f   :  { %636 = vmatpush.msra.mxu1 %v555_v3 }
 0x171   :  { %637 = vmatpush.msra.mxu1 %v554_v6 }
 0x173   :  { %638 = vmatpush.msra.mxu1 %v553_v9 }
 0x175   :  { %639 = vmatpush.msra.mxu1 %v552_v12 }
 0x1d3   :  { %v469_v21 = vpop.f32.mrf.mxu1 }
 0x1d4   :  { %v470_v22 = vadd.f32 %v469_v21, %v440_v20 }
 0x1d6   :  { %v532_v23 = vmax.f32 %v470_v22, 0.0 }
 0x1d8   :  { %620 = vmatmul.f32.vlgmr.msra.gmra.mxu0 %v532_v23 }
 0x1d9   :  { %v509_v27 = vpop.f32.mrf.mxu2 }
 0x1da   :  { %v510_v28 = vadd.f32 %v509_v27, %v442_v24  ;;  %v529_v29 = vpop.f32.mrf.mxu3 }
 0x1db   :  { %v530_v30 = vadd.f32 %v529_v29, %v443_v25  ;;  %v489_v31 = vpop.f32.mrf.mxu1 }
 0x1dc   :  { %v534_v32 = vmax.f32 %v510_v28, 0.0  ;;  %v490_v33 = vadd.f32 %v489_v31, %v441_v26 }
 0x1dd   :  { %v535_v34 = vmax.f32 %v530_v30, 0.0 }
 0x1de   :  { %v533_v35 = vmax.f32 %v490_v33, 0.0  ;;  %660 = vmatmul.f32.vlgmr.msrb.gmra.mxu2 %v534_v32 }
 0x1df   :  { %680 = vmatmul.f32.vlgmr.msrb.gmra.mxu3 %v535_v34 }
 0x1e0   :  { %640 = vmatmul.f32.vlgmr.msra.gmra.mxu1 %v533_v35 }
 0x255   :  { %v621_v47 = vpop.f32.mrf.mxu0 }
 0x256   :  { %v622_v49 = vadd.f32 %v750_v46, %v621_v47 }
 0x25d   :  { %v641_v48 = vpop.f32.mrf.mxu1 }
 0x25e   :  { %v642_v50 = vadd.f32 %v641_v48, %v622_v49 }
 0x261   :  { %v661_v51 = vpop.f32.mrf.mxu2 }
 0x262   :  { %v662_v52 = vadd.f32 %v661_v51, %v642_v50  ;;  %v681_v53 = vpop.f32.mrf.mxu3 }
 0x264   :  { %v682_v54 = vadd.f32 %v681_v53, %v662_v52 }
 0x266   :  { %v684_v55 = vmax.f32 %v682_v54, 0.0 }
 0x268   :  { %721 = vmatmul.f32.vlgmr.msrb.gmra.mxu0 %v684_v55 }
 0x2e5   :  { %v722_v57 = vpop.f32.mrf.mxu0 }
 0x2e6   :  { %v723_v58 = vadd.f32 %v751_v56, %v722_v57 }
 0x2e8   :  { %726 = vst.msk [vmem:[#allocation3] sm:$0x3] %vm725_vm2, %v723_v58 }
 0x2e9   :  { %737 = dma.vmem_to_hbm [thread:$0]  %s733_s16, 32, %s735_s7, [#allocation4]  }
 0x2ea   :  { %776 = dma.done.wait [#allocation4], 32  }
 0x2eb   :  { %777 = vsyncadd [#allocation4], 4294967264 }
 0x2ec   :  { %742 = vsyncpa [#allocation4], 1 }

</bundles_post_ra>
